<compile_context>
chip_gen: v7x
topology: tpu7x:2x2x1
jax: 0.10.0
libtpu: 0.0.40
codegen_flags: <defaults>
</compile_context>

<pallas_src>
import jax
import jax.numpy as jnp
from jax.experimental import pallas as pl
from jax.experimental.pallas import tpu as pltpu

MAX_LENGTH = 15
D_WINDOW = 5  # self.D in the PyTorch module


def _round_up(x, m):
    return ((x + m - 1) // m) * m


def attn_decoder_decode(params, tokens, hidden, c, encoder_outputs):
    """Fused (multi-)step decode.

    tokens: (n_steps, B) int32 -- token fed at each decode step (teacher forcing).
    Returns per-step log_probs (n_steps, B, V), final hidden (1, B, H),
    final cell (1, B, H), per-step attention weights (n_steps, B, 1, L).
    The PyTorch module's forward is exactly n_steps == 1.
    """
    n_steps, B = tokens.shape
    L, Benc, twoH = encoder_outputs.shape
    H = hidden.shape[-1]
    V = params["W_out"].shape[0]
    assert Benc == B and twoH == 2 * H

    Bp = _round_up(max(B, 8), 8)            # sublane-dense batch
    LP = _round_up(L + 1, 8)                # score columns: L scores + 1 p_t column, padded
    STATE_W = _round_up(3 * H, 128)         # [h | e | c | pad] state slab width
    WTOT = _round_up((L + 5) * H, 128)      # fused-matmul output width
    AW = WTOT - 4 * H                       # attention-region width (>= (L+1)*H)
    W2_ROWS = _round_up(3 * H + 2, 8)
    W2_COLS = _round_up(max(4 * H, V), 128)
    SLAB = _round_up(V + 2 * H + LP, 128)   # packed output slab width
    GAUSS_DEN = (D_WINDOW / 2.0) ** 2

    f32 = jnp.float32

    # ---- per-step embeddings (dropout = identity in eval mode), batch padded to Bp
    embeds = params["embedding"][tokens]                           # (n_steps, B, H)
    embeds = jnp.pad(embeds, ((0, 0), (0, Bp - B), (0, 0)))

    # ---- initial state slab [h | e(=0, filled in-kernel per step) | c | pad]
    init = jnp.zeros((Bp, STATE_W), f32)
    init = init.at[:B, 0:H].set(hidden.reshape(B, H))
    init = init.at[:B, 2 * H:3 * H].set(c.reshape(B, H))

    # ---- encUa slab (constant across steps): block l = encoder_outputs[l] @ Ua
    encua = jnp.einsum('lbd,dh->blh', encoder_outputs, params["Ua"]).reshape(B, L * H)
    encua_ext = jnp.zeros((Bp, AW), f32).at[:B, 0:L * H].set(encua)

    # ---- context slab: torch .view(B, L, 2H) reinterpretation, L padded to LP
    enc_view = encoder_outputs.reshape(B, L, twoH)
    enc_ctx = jnp.zeros((Bp, LP, twoH), f32).at[:B, 0:L, :].set(enc_view)

    # ---- fused [h|e]-LHS weight: cols = [gates (4H) | Wa tiled L times | W_p | 0-pad]
    wihT = params["W_ih"].T                                        # (3H, 4H)
    wbig = jnp.zeros((2 * H, WTOT), f32)
    wbig = wbig.at[0:H, 0:4 * H].set(params["W_hh"].T)             # h -> gate part
    wbig = wbig.at[H:2 * H, 0:4 * H].set(wihT[0:H])                # e -> gate part (W_ih_e)
    wbig = wbig.at[0:H, 4 * H:4 * H + L * H].set(jnp.tile(params["Wa"], (1, L)))
    wbig = wbig.at[0:H, 4 * H + L * H:4 * H + (L + 1) * H].set(params["W_p"])

    # ---- block-diagonal reduce: col l<L = ba on block l, col L = V_p on block L (p_t)
    R = jnp.zeros((AW, LP), f32)
    R = R.at[0:L * H, :].set(jnp.kron(jnp.eye(L, LP, dtype=f32), params["ba"][:, None]))
    R = R.at[L * H:(L + 1) * H, L].set(params["V_p"])

    # ---- small weights slab: W_ih_c | W_out^T | b_lstm | b_out (one DMA)
    w2 = jnp.zeros((W2_ROWS, W2_COLS), f32)
    w2 = w2.at[0:2 * H, 0:4 * H].set(wihT[H:3 * H])
    w2 = w2.at[2 * H:3 * H, 0:V].set(params["W_out"].T)
    w2 = w2.at[3 * H, 0:4 * H].set(params["b_ih"] + params["b_hh"])
    w2 = w2.at[3 * H + 1, 0:V].set(params["b_out"])

    def kernel(embed_ref, init_ref, encua_ref, encctx_ref, wbig_ref, r_ref, w2_ref,
               out_ref, state_sc):
        step = pl.program_id(0)

        @pl.when(step == 0)
        def _():
            state_sc[...] = init_ref[...]

        # this step's embedding into the packed state slab (lanes H:2H)
        state_sc[:, H:2 * H] = embed_ref[0]

        he = state_sc[:, 0:2 * H]                     # [h | e] contiguous lanes
        c_prev = state_sc[:, 2 * H:3 * H]

        # one fused MXU op: LSTM-gate part + L broadcast copies of hWa + hWp
        h_proj = jnp.dot(he, wbig_ref[...], preferred_element_type=jnp.float32)

        # attention scores + p_t, fully lane-dense; per-block reduce on the MXU via R
        attn_in = encua_ref[...] + h_proj[:, 4 * H:WTOT]               # (Bp, AW)
        sc_pt = jnp.dot(jnp.tanh(attn_in), r_ref[...],
                        preferred_element_type=jnp.float32)            # (Bp, LP)

        p_t = float(L) * jax.nn.sigmoid(sc_pt[:, L:L + 1])             # (Bp, 1)
        pos_i = jax.lax.broadcasted_iota(jnp.int32, (Bp, LP), 1)
        pos = pos_i.astype(jnp.float32)
        # positive exponent, exactly as written in the reference module
        gauss = jnp.exp(((pos - p_t) ** 2) / GAUSS_DEN)
        z = jnp.where(pos_i < L, sc_pt * gauss, -1e30)
        z = z - jnp.max(z, axis=1, keepdims=True)
        ez = jnp.exp(z)
        attn = ez / jnp.sum(ez, axis=1, keepdims=True)                 # exact divide

        # context vector over the torch .view(B, L, 2H) reinterpretation (L padded)
        ctx = jnp.sum(attn[:, :, None] * encctx_ref[...], axis=1)      # (Bp, 2H)

        # single-step LSTM (PyTorch gate order i, f, g, o)
        gates = (h_proj[:, 0:4 * H]
                 + jnp.dot(ctx, w2_ref[0:2 * H, 0:4 * H],
                           preferred_element_type=jnp.float32)
                 + w2_ref[3 * H:3 * H + 1, 0:4 * H])
        i_g = jax.nn.sigmoid(gates[:, 0:H])
        f_g = jax.nn.sigmoid(gates[:, H:2 * H])
        g_g = jnp.tanh(gates[:, 2 * H:3 * H])
        o_g = jax.nn.sigmoid(gates[:, 3 * H:4 * H])
        c_new = f_g * c_prev + i_g * g_g
        h_new = o_g * jnp.tanh(c_new)

        # carry state to the next decode step
        state_sc[:, 0:H] = h_new
        state_sc[:, 2 * H:3 * H] = c_new

        # output projection + log_softmax
        logits = (jnp.dot(h_new, w2_ref[2 * H:3 * H, 0:V],
                          preferred_element_type=jnp.float32)
                  + w2_ref[3 * H + 1:3 * H + 2, 0:V])
        m = jnp.max(logits, axis=1, keepdims=True)
        logp = logits - (m + jnp.log(jnp.sum(jnp.exp(logits - m), axis=1, keepdims=True)))

        # single lane-dense packed store: [logp | h | c | attn | zero-pad]
        pieces = [logp, h_new, c_new, attn]
        pad = SLAB - (V + 2 * H + LP)
        if pad > 0:
            pieces.append(jnp.zeros((Bp, pad), jnp.float32))
        out_ref[0] = jnp.concatenate(pieces, axis=1)

    slab = pl.pallas_call(
        kernel,
        out_shape=jax.ShapeDtypeStruct((n_steps, Bp, SLAB), f32),
        grid=(n_steps,),
        in_specs=[
            pl.BlockSpec((1, Bp, H), lambda s: (s, 0, 0)),        # per-step embedding
            pl.BlockSpec((Bp, STATE_W), lambda s: (0, 0)),        # init state (resident)
            pl.BlockSpec((Bp, AW), lambda s: (0, 0)),             # encUa slab (resident)
            pl.BlockSpec((Bp, LP, twoH), lambda s: (0, 0, 0)),    # enc ctx slab (resident)
            pl.BlockSpec((2 * H, WTOT), lambda s: (0, 0)),        # fused W_big (resident)
            pl.BlockSpec((AW, LP), lambda s: (0, 0)),             # block-diag R (resident)
            pl.BlockSpec((W2_ROWS, W2_COLS), lambda s: (0, 0)),   # small weights (resident)
        ],
        out_specs=pl.BlockSpec((1, Bp, SLAB), lambda s: (s, 0, 0)),
        scratch_shapes=[pltpu.VMEM((Bp, STATE_W), f32)],
        compiler_params=pltpu.CompilerParams(
            dimension_semantics=("arbitrary",)),
    )(embeds, init, encua_ext, enc_ctx, wbig, R, w2)

    logp = slab[:, :B, 0:V]
    h_fin = slab[-1, :B, V:V + H].reshape(1, B, H)
    c_fin = slab[-1, :B, V + H:V + 2 * H].reshape(1, B, H)
    attn = slab[:, :B, V + 2 * H:V + 2 * H + L].reshape(n_steps, B, 1, L)
    return logp, h_fin, c_fin, attn


def attn_decoder_forward(params, token_ids, hidden, c, encoder_outputs):
    """Single decode step == the PyTorch module's forward (n_steps = 1)."""
    logp, h_new, c_new, attn = attn_decoder_decode(params, token_ids, hidden, c,
                                                   encoder_outputs)
    return logp[0], h_new, c_new, attn[0]


def reference_forward(params, token_ids, hidden, c, encoder_outputs):
    """Pure-JAX mirror of the PyTorch forward (eval-mode dropout)."""
    L, B, twoH = encoder_outputs.shape
    H = hidden.shape[-1]
    embed = params["embedding"][token_ids[0]]
    h = hidden.reshape(B, H)
    cols = []
    for i in range(L):
        tmp = jnp.tanh(h @ params["Wa"] + encoder_outputs[i] @ params["Ua"])
        cols.append(tmp @ params["ba"])
    scores = jnp.stack(cols, axis=1)                                        # (B, L)
    p_t = L * jax.nn.sigmoid(jnp.tanh(h @ params["W_p"]) @ params["V_p"])   # (B,)
    pos = jnp.arange(L, dtype=jnp.float32)[None, :]
    gauss = jnp.exp((pos - p_t[:, None]) ** 2 / (D_WINDOW / 2.0) ** 2)
    attn = jax.nn.softmax(scores * gauss, axis=1)
    enc_view = encoder_outputs.reshape(B, L, twoH)
    ctx = jnp.einsum('bl,bld->bd', attn, enc_view)
    x = jnp.concatenate([embed, ctx], axis=1)
    gates = x @ params["W_ih"].T + params["b_ih"] + h @ params["W_hh"].T + params["b_hh"]
    i_g, f_g, g_g, o_g = jnp.split(gates, 4, axis=1)
    c_new = jax.nn.sigmoid(f_g) * c.reshape(B, H) + jax.nn.sigmoid(i_g) * jnp.tanh(g_g)
    h_new = jax.nn.sigmoid(o_g) * jnp.tanh(c_new)
    logits = h_new @ params["W_out"].T + params["b_out"]
    logp = jax.nn.log_softmax(logits, axis=1)
    return logp, h_new.reshape(1, B, H), c_new.reshape(1, B, H), attn.reshape(B, 1, L)


def init_params(key, hidden_size, output_size):
    """Deterministic synthetic init (module's __init__ gives the shapes; zeros/ones
    replaced by small randoms so the kernel exercises non-trivial compute)."""
    H, V = hidden_size, output_size
    ks = jax.random.split(key, 12)
    s = 0.1
    return {
        "embedding": s * jax.random.normal(ks[0], (V, H), jnp.float32),
        "Wa":        s * jax.random.normal(ks[1], (H, H), jnp.float32),
        "Ua":        s * jax.random.normal(ks[2], (2 * H, H), jnp.float32),
        "ba":        jnp.ones((H,), jnp.float32),
        "W_p":       s * jax.random.normal(ks[3], (H, H), jnp.float32),
        "V_p":       s * jax.random.normal(ks[4], (H,), jnp.float32),
        "W_ih":      s * jax.random.normal(ks[5], (4 * H, 3 * H), jnp.float32),
        "W_hh":      s * jax.random.normal(ks[6], (4 * H, H), jnp.float32),
        "b_ih":      s * jax.random.normal(ks[7], (4 * H,), jnp.float32),
        "b_hh":      s * jax.random.normal(ks[8], (4 * H,), jnp.float32),
        "W_out":     s * jax.random.normal(ks[9], (V, H), jnp.float32),
        "b_out":     s * jax.random.normal(ks[10], (V,), jnp.float32),
    }


if __name__ == "__main__":
    H, V, B, L = 32, 64, 2, MAX_LENGTH
    key = jax.random.PRNGKey(0)
    kp, k1, k2, k3, k4, k5 = jax.random.split(key, 6)

    params = init_params(kp, H, V)
    token_ids = jax.random.randint(k1, (1, B), 0, V, dtype=jnp.int32)
    hidden = 0.1 * jax.random.normal(k2, (1, B, H), jnp.float32)
    c = 0.1 * jax.random.normal(k3, (1, B, H), jnp.float32)
    encoder_outputs = 0.1 * jax.random.normal(k4, (L, B, 2 * H), jnp.float32)

    # ---- single decode step (the module's forward) ----
    outs = jax.block_until_ready(
        attn_decoder_forward(params, token_ids, hidden, c, encoder_outputs))
    refs = reference_forward(params, token_ids, hidden, c, encoder_outputs)
    for got, want in zip(outs, refs):
        assert got.shape == want.shape, (got.shape, want.shape)
        assert jnp.allclose(got, want, rtol=2e-3, atol=2e-3), float(jnp.max(jnp.abs(got - want)))

    # ---- fused multi-step decode (weights resident, h/c carried in VMEM scratch) ----
    n_steps = 4
    tokens = jax.random.randint(k5, (n_steps, B), 0, V, dtype=jnp.int32)
    f_logp, f_h, f_c, f_attn = jax.block_until_ready(
        attn_decoder_decode(params, tokens, hidden, c, encoder_outputs))
    r_h, r_c = hidden, c
    for t in range(n_steps):
        r_logp, r_h, r_c, r_attn = reference_forward(params, tokens[t:t + 1], r_h, r_c,
                                                     encoder_outputs)
        assert jnp.allclose(f_logp[t], r_logp, rtol=2e-3, atol=2e-3)
        assert jnp.allclose(f_attn[t], r_attn, rtol=2e-3, atol=2e-3)
    assert jnp.allclose(f_h, r_h, rtol=2e-3, atol=2e-3)
    assert jnp.allclose(f_c, r_c, rtol=2e-3, atol=2e-3)

    print("KERNEL_OK")
</pallas_src>

<mosaic_0001>
module attributes {stable_mosaic.version = 11 : i64} {
  func.func @kernel(%arg0: i32, %arg1: memref<1x8x32xf32, #tpu.memory_space<vmem>>, %arg2: memref<8x128xf32, #tpu.memory_space<vmem>>, %arg3: memref<8x512xf32, #tpu.memory_space<vmem>>, %arg4: memref<8x16x64xf32, #tpu.memory_space<vmem>>, %arg5: memref<64x640xf32, #tpu.memory_space<vmem>>, %arg6: memref<512x16xf32, #tpu.memory_space<vmem>>, %arg7: memref<104x128xf32, #tpu.memory_space<vmem>>, %arg8: memref<1x8x256xf32, #tpu.memory_space<vmem>>, %arg9: memref<8x128xf32, #tpu.memory_space<vmem>>) attributes {dimension_semantics = [#tpu.dimension_semantics<arbitrary>], iteration_bounds = array<i64: 1>, scalar_prefetch = 0 : i64, scratch_operands = 1 : i64, tpu.core_type = #tpu.core_type<tc>, window_params = [{transform_indices = @transform_0, window_bounds = array<i64: 1, 8, 32>}, {pipeline_mode = #tpu.pipeline_mode<synchronous>, transform_indices = @transform_1, window_bounds = array<i64: 8, 128>}, {pipeline_mode = #tpu.pipeline_mode<synchronous>, transform_indices = @transform_2, window_bounds = array<i64: 8, 512>}, {pipeline_mode = #tpu.pipeline_mode<synchronous>, transform_indices = @transform_3, window_bounds = array<i64: 8, 16, 64>}, {pipeline_mode = #tpu.pipeline_mode<synchronous>, transform_indices = @transform_4, window_bounds = array<i64: 64, 640>}, {pipeline_mode = #tpu.pipeline_mode<synchronous>, transform_indices = @transform_5, window_bounds = array<i64: 512, 16>}, {pipeline_mode = #tpu.pipeline_mode<synchronous>, transform_indices = @transform_6, window_bounds = array<i64: 104, 128>}, {transform_indices = @transform_7, window_bounds = array<i64: 1, 8, 256>}]} {
    %c0_i32 = arith.constant 0 : i32
    %0 = arith.cmpi eq, %arg0, %c0_i32 : i32
    %1 = arith.extui %0 : i1 to i32
    %c0_i32_0 = arith.constant 0 : i32
    %2 = arith.cmpi ne, %1, %c0_i32_0 : i32
    scf.if %2 {
      %c0_45 = arith.constant 0 : index
      %c0_46 = arith.constant 0 : index
      %106 = vector.load %arg2[%c0_45, %c0_46] : memref<8x128xf32, #tpu.memory_space<vmem>>, vector<8x128xf32>
      %c0_47 = arith.constant 0 : index
      %c0_48 = arith.constant 0 : index
      %107 = vector.load %arg9[%c0_47, %c0_48] : memref<8x128xf32, #tpu.memory_space<vmem>>, vector<8x128xf32>
      tpu.vector_store %arg9[%c0_47, %c0_48], %106 {strides = array<i32>} : memref<8x128xf32, #tpu.memory_space<vmem>>, vector<8x128xf32>,
    } else {
    }
    %c0 = arith.constant 0 : index
    %c0_1 = arith.constant 0 : index
    %c0_2 = arith.constant 0 : index
    %3 = vector.load %arg1[%c0, %c0_1, %c0_2] : memref<1x8x32xf32, #tpu.memory_space<vmem>>, vector<1x8x32xf32>
    %4 = vector.shape_cast %3 : vector<1x8x32xf32> to vector<8x32xf32>
    %c0_3 = arith.constant 0 : index
    %c32 = arith.constant 32 : index
    %5 = vector.load %arg9[%c0_3, %c32] : memref<8x128xf32, #tpu.memory_space<vmem>>, vector<8x32xf32>
    tpu.vector_store %arg9[%c0_3, %c32], %4 {strides = array<i32>} : memref<8x128xf32, #tpu.memory_space<vmem>>, vector<8x32xf32>,
    %c0_4 = arith.constant 0 : index
    %c0_5 = arith.constant 0 : index
    %6 = vector.load %arg9[%c0_4, %c0_5] : memref<8x128xf32, #tpu.memory_space<vmem>>, vector<8x64xf32>
    %c0_6 = arith.constant 0 : index
    %c64 = arith.constant 64 : index
    %7 = vector.load %arg9[%c0_6, %c64] : memref<8x128xf32, #tpu.memory_space<vmem>>, vector<8x32xf32>
    %c0_7 = arith.constant 0 : index
    %c0_8 = arith.constant 0 : index
    %8 = vector.load %arg5[%c0_7, %c0_8] : memref<64x640xf32, #tpu.memory_space<vmem>>, vector<64x640xf32>
    %cst = arith.constant dense<0.000000e+00> : vector<8x640xf32>
    %9 = tpu.matmul %6, %8, %cst {dimension_numbers = #tpu.dot_dimension_numbers<[1], [0], [0], [1], [0, 0, 1, 1], [], []>} : vector<8x64xf32>, vector<64x640xf32>, vector<8x640xf32> -> vector<8x640xf32>
    %c0_9 = arith.constant 0 : index
    %c0_10 = arith.constant 0 : index
    %10 = vector.load %arg3[%c0_9, %c0_10] : memref<8x512xf32, #tpu.memory_space<vmem>>, vector<8x512xf32>
    %11 = vector.extract_strided_slice %9 {offsets = [0, 128], sizes = [8, 512], strides = [1, 1]} : vector<8x640xf32> to vector<8x512xf32>
    %12 = arith.addf %10, %11 : vector<8x512xf32>
    %13 = math.tanh %12 : vector<8x512xf32>
    %c0_11 = arith.constant 0 : index
    %c0_12 = arith.constant 0 : index
    %14 = vector.load %arg6[%c0_11, %c0_12] : memref<512x16xf32, #tpu.memory_space<vmem>>, vector<512x16xf32>
    %cst_13 = arith.constant dense<0.000000e+00> : vector<8x16xf32>
    %15 = tpu.matmul %13, %14, %cst_13 {dimension_numbers = #tpu.dot_dimension_numbers<[1], [0], [0], [1], [0, 0, 1, 1], [], []>} : vector<8x512xf32>, vector<512x16xf32>, vector<8x16xf32> -> vector<8x16xf32>
    %16 = vector.extract_strided_slice %15 {offsets = [0, 15], sizes = [8, 1], strides = [1, 1]} : vector<8x16xf32> to vector<8x1xf32>
    %17 = arith.negf %16 : vector<8x1xf32>
    %18 = math.exp %17 : vector<8x1xf32>
    %cst_14 = arith.constant 1.000000e+00 : f32
    %19 = vector.broadcast %cst_14 : f32 to vector<8x1xf32>
    %20 = arith.addf %19, %18 : vector<8x1xf32>
    %21 = arith.divf %19, %20 : vector<8x1xf32>
    %cst_15 = arith.constant 1.500000e+01 : f32
    %22 = vector.broadcast %cst_15 : f32 to vector<8x1xf32>
    %23 = arith.mulf %22, %21 : vector<8x1xf32>
    %24 = tpu.iota {dimensions = array<i32: 1>} : vector<8x16xi32>
    %25 = arith.sitofp %24 : vector<8x16xi32> to vector<8x16xf32>
    %26 = vector.broadcast %23 : vector<8x1xf32> to vector<8x16xf32>
    %27 = arith.subf %25, %26 : vector<8x16xf32>
    %28 = arith.mulf %27, %27 : vector<8x16xf32>
    %cst_16 = arith.constant 6.250000e+00 : f32
    %29 = vector.broadcast %cst_16 : f32 to vector<8x16xf32>
    %30 = arith.divf %28, %29 : vector<8x16xf32>
    %31 = math.exp %30 : vector<8x16xf32>
    %c15_i32 = arith.constant 15 : i32
    %32 = vector.broadcast %c15_i32 : i32 to vector<8x16xi32>
    %33 = arith.cmpi slt, %24, %32 : vector<8x16xi32>
    %34 = arith.mulf %15, %31 : vector<8x16xf32>
    %cst_17 = arith.constant -1.000000e+30 : f32
    %35 = vector.broadcast %cst_17 : f32 to vector<8x16xf32>
    %36 = arith.select %33, %34, %35 : vector<8x16xi1>, vector<8x16xf32>
    %cst_18 = arith.constant dense<0xFF800000> : vector<8xf32>
    %37 = vector.multi_reduction <maximumf>, %36, %cst_18 [1] : vector<8x16xf32> to vector<8xf32>
    %38 = vector.shape_cast %37 : vector<8xf32> to vector<8x1xf32>
    %39 = vector.broadcast %38 : vector<8x1xf32> to vector<8x16xf32>
    %40 = arith.subf %36, %39 : vector<8x16xf32>
    %41 = math.exp %40 : vector<8x16xf32>
    %cst_19 = arith.constant dense<0.000000e+00> : vector<8xf32>
    %42 = vector.multi_reduction <add>, %41, %cst_19 [1] : vector<8x16xf32> to vector<8xf32>
    %43 = vector.shape_cast %42 : vector<8xf32> to vector<8x1xf32>
    %44 = vector.broadcast %43 : vector<8x1xf32> to vector<8x16xf32>
    %45 = arith.divf %41, %44 : vector<8x16xf32>
    %46 = vector.shape_cast %45 : vector<8x16xf32> to vector<8x16x1xf32>
    %c0_20 = arith.constant 0 : index
    %c0_21 = arith.constant 0 : index
    %c0_22 = arith.constant 0 : index
    %47 = vector.load %arg4[%c0_20, %c0_21, %c0_22] : memref<8x16x64xf32, #tpu.memory_space<vmem>>, vector<8x16x64xf32>
    %48 = vector.broadcast %46 : vector<8x16x1xf32> to vector<8x16x64xf32>
    %49 = arith.mulf %48, %47 : vector<8x16x64xf32>
    %cst_23 = arith.constant dense<0.000000e+00> : vector<8x64xf32>
    %50 = vector.multi_reduction <add>, %49, %cst_23 [1] : vector<8x16x64xf32> to vector<8x64xf32>
    %51 = vector.extract_strided_slice %9 {offsets = [0, 0], sizes = [8, 128], strides = [1, 1]} : vector<8x640xf32> to vector<8x128xf32>
    %c0_24 = arith.constant 0 : index
    %c0_25 = arith.constant 0 : index
    %52 = vector.load %arg7[%c0_24, %c0_25] : memref<104x128xf32, #tpu.memory_space<vmem>>, vector<64x128xf32>
    %cst_26 = arith.constant dense<0.000000e+00> : vector<8x128xf32>
    %53 = tpu.matmul %50, %52, %cst_26 {dimension_numbers = #tpu.dot_dimension_numbers<[1], [0], [0], [1], [0, 0, 1, 1], [], []>} : vector<8x64xf32>, vector<64x128xf32>, vector<8x128xf32> -> vector<8x128xf32>
    %54 = arith.addf %51, %53 : vector<8x128xf32>
    %c96 = arith.constant 96 : index
    %c0_27 = arith.constant 0 : index
    %55 = vector.load %arg7[%c96, %c0_27] : memref<104x128xf32, #tpu.memory_space<vmem>>, vector<1x128xf32>
    %56 = vector.broadcast %55 : vector<1x128xf32> to vector<8x128xf32>
    %57 = arith.addf %54, %56 : vector<8x128xf32>
    %58 = vector.extract_strided_slice %57 {offsets = [0, 0], sizes = [8, 32], strides = [1, 1]} : vector<8x128xf32> to vector<8x32xf32>
    %59 = arith.negf %58 : vector<8x32xf32>
    %60 = math.exp %59 : vector<8x32xf32>
    %cst_28 = arith.constant 1.000000e+00 : f32
    %61 = vector.broadcast %cst_28 : f32 to vector<8x32xf32>
    %62 = arith.addf %61, %60 : vector<8x32xf32>
    %63 = arith.divf %61, %62 : vector<8x32xf32>
    %64 = vector.extract_strided_slice %57 {offsets = [0, 32], sizes = [8, 32], strides = [1, 1]} : vector<8x128xf32> to vector<8x32xf32>
    %65 = arith.negf %64 : vector<8x32xf32>
    %66 = math.exp %65 : vector<8x32xf32>
    %cst_29 = arith.constant 1.000000e+00 : f32
    %67 = vector.broadcast %cst_29 : f32 to vector<8x32xf32>
    %68 = arith.addf %67, %66 : vector<8x32xf32>
    %69 = arith.divf %67, %68 : vector<8x32xf32>
    %70 = vector.extract_strided_slice %57 {offsets = [0, 64], sizes = [8, 32], strides = [1, 1]} : vector<8x128xf32> to vector<8x32xf32>
    %71 = math.tanh %70 : vector<8x32xf32>
    %72 = vector.extract_strided_slice %57 {offsets = [0, 96], sizes = [8, 32], strides = [1, 1]} : vector<8x128xf32> to vector<8x32xf32>
    %73 = arith.negf %72 : vector<8x32xf32>
    %74 = math.exp %73 : vector<8x32xf32>
    %cst_30 = arith.constant 1.000000e+00 : f32
    %75 = vector.broadcast %cst_30 : f32 to vector<8x32xf32>
    %76 = arith.addf %75, %74 : vector<8x32xf32>
    %77 = arith.divf %75, %76 : vector<8x32xf32>
    %78 = arith.mulf %69, %7 : vector<8x32xf32>
    %79 = arith.mulf %63, %71 : vector<8x32xf32>
    %80 = arith.addf %78, %79 : vector<8x32xf32>
    %81 = math.tanh %80 : vector<8x32xf32>
    %82 = arith.mulf %77, %81 : vector<8x32xf32>
    %c0_31 = arith.constant 0 : index
    %c0_32 = arith.constant 0 : index
    %83 = vector.load %arg9[%c0_31, %c0_32] : memref<8x128xf32, #tpu.memory_space<vmem>>, vector<8x32xf32>
    tpu.vector_store %arg9[%c0_31, %c0_32], %82 {strides = array<i32>} : memref<8x128xf32, #tpu.memory_space<vmem>>, vector<8x32xf32>,
    %c0_33 = arith.constant 0 : index
    %c64_34 = arith.constant 64 : index
    %84 = vector.load %arg9[%c0_33, %c64_34] : memref<8x128xf32, #tpu.memory_space<vmem>>, vector<8x32xf32>
    tpu.vector_store %arg9[%c0_33, %c64_34], %80 {strides = array<i32>} : memref<8x128xf32, #tpu.memory_space<vmem>>, vector<8x32xf32>,
    %c64_35 = arith.constant 64 : index
    %c0_36 = arith.constant 0 : index
    %85 = vector.load %arg7[%c64_35, %c0_36] : memref<104x128xf32, #tpu.memory_space<vmem>>, vector<32x64xf32>
    %cst_37 = arith.constant dense<0.000000e+00> : vector<8x64xf32>
    %86 = tpu.matmul %82, %85, %cst_37 {dimension_numbers = #tpu.dot_dimension_numbers<[1], [0], [0], [1], [0, 0, 1, 1], [], []>} : vector<8x32xf32>, vector<32x64xf32>, vector<8x64xf32> -> vector<8x64xf32>
    %c97 = arith.constant 97 : index
    %c0_38 = arith.constant 0 : index
    %87 = vector.load %arg7[%c97, %c0_38] : memref<104x128xf32, #tpu.memory_space<vmem>>, vector<1x64xf32>
    %88 = vector.broadcast %87 : vector<1x64xf32> to vector<8x64xf32>
    %89 = arith.addf %86, %88 : vector<8x64xf32>
    %cst_39 = arith.constant dense<0xFF800000> : vector<8xf32>
    %90 = vector.multi_reduction <maximumf>, %89, %cst_39 [1] : vector<8x64xf32> to vector<8xf32>
    %91 = vector.shape_cast %90 : vector<8xf32> to vector<8x1xf32>
    %92 = vector.broadcast %91 : vector<8x1xf32> to vector<8x64xf32>
    %93 = arith.subf %89, %92 : vector<8x64xf32>
    %94 = math.exp %93 : vector<8x64xf32>
    %cst_40 = arith.constant dense<0.000000e+00> : vector<8xf32>
    %95 = vector.multi_reduction <add>, %94, %cst_40 [1] : vector<8x64xf32> to vector<8xf32>
    %96 = vector.shape_cast %95 : vector<8xf32> to vector<8x1xf32>
    %97 = math.log %96 : vector<8x1xf32>
    %98 = arith.addf %91, %97 : vector<8x1xf32>
    %99 = vector.broadcast %98 : vector<8x1xf32> to vector<8x64xf32>
    %100 = arith.subf %89, %99 : vector<8x64xf32>
    %cst_41 = arith.constant 0.000000e+00 : f32
    %101 = vector.broadcast %cst_41 : f32 to vector<8x112xf32>
    %102 = tpu.concatenate %100, %82, %80, %45, %101 in 1 : vector<8x64xf32>, vector<8x32xf32>, vector<8x32xf32>, vector<8x16xf32>, vector<8x112xf32> -> vector<8x256xf32>
    %c0_42 = arith.constant 0 : index
    %c0_43 = arith.constant 0 : index
    %c0_44 = arith.constant 0 : index
    %103 = vector.load %arg8[%c0_42, %c0_43, %c0_44] : memref<1x8x256xf32, #tpu.memory_space<vmem>>, vector<1x8x256xf32>
    %104 = vector.shape_cast %103 : vector<1x8x256xf32> to vector<8x256xf32>
    %105 = vector.shape_cast %102 : vector<8x256xf32> to vector<1x8x256xf32>
    tpu.vector_store %arg8[%c0_42, %c0_43, %c0_44], %105 {strides = array<i32>} : memref<1x8x256xf32, #tpu.memory_space<vmem>>, vector<1x8x256xf32>,
    return
  }
  func.func @transform_0(%arg0: i32) -> (i32, i32, i32) {
    %c0_i32 = arith.constant 0 : i32
    %c0_i32_0 = arith.constant 0 : i32
    %c0_i32_1 = arith.constant 0 : i32
    return %arg0, %c0_i32, %c0_i32_0 : i32, i32, i32
  }
  func.func @transform_1(%arg0: i32) -> (i32, i32) {
    %c0_i32 = arith.constant 0 : i32
    %c0_i32_0 = arith.constant 0 : i32
    %c0_i32_1 = arith.constant 0 : i32
    return %c0_i32, %c0_i32_0 : i32, i32
  }
  func.func @transform_2(%arg0: i32) -> (i32, i32) {
    %c0_i32 = arith.constant 0 : i32
    %c0_i32_0 = arith.constant 0 : i32
    %c0_i32_1 = arith.constant 0 : i32
    return %c0_i32, %c0_i32_0 : i32, i32
  }
  func.func @transform_3(%arg0: i32) -> (i32, i32, i32) {
    %c0_i32 = arith.constant 0 : i32
    %c0_i32_0 = arith.constant 0 : i32
    %c0_i32_1 = arith.constant 0 : i32
    %c0_i32_2 = arith.constant 0 : i32
    return %c0_i32, %c0_i32_0, %c0_i32_1 : i32, i32, i32
  }
  func.func @transform_4(%arg0: i32) -> (i32, i32) {
    %c0_i32 = arith.constant 0 : i32
    %c0_i32_0 = arith.constant 0 : i32
    %c0_i32_1 = arith.constant 0 : i32
    return %c0_i32, %c0_i32_0 : i32, i32
  }
  func.func @transform_5(%arg0: i32) -> (i32, i32) {
    %c0_i32 = arith.constant 0 : i32
    %c0_i32_0 = arith.constant 0 : i32
    %c0_i32_1 = arith.constant 0 : i32
    return %c0_i32, %c0_i32_0 : i32, i32
  }
  func.func @transform_6(%arg0: i32) -> (i32, i32) {
    %c0_i32 = arith.constant 0 : i32
    %c0_i32_0 = arith.constant 0 : i32
    %c0_i32_1 = arith.constant 0 : i32
    return %c0_i32, %c0_i32_0 : i32, i32
  }
  func.func @transform_7(%arg0: i32) -> (i32, i32, i32) {
    %c0_i32 = arith.constant 0 : i32
    %c0_i32_0 = arith.constant 0 : i32
    %c0_i32_1 = arith.constant 0 : i32
    return %arg0, %c0_i32, %c0_i32_0 : i32, i32, i32
  }
}

</mosaic_0001>

<bundles_post_ra>
// kernel: tpu_custom_call.1
= control target key start
LH: loop header
LB: loop body
LE: loop exit
PB: predicated region body
PF: predicated region fallthrough
CT: control target
= control target key end

     0   :  { %12 = vsyncpa [#allocation4], 0  ;;  %s1987_s0 = inlined_call_operand.hbm [shape: f32[1,8,32], index: 0, kind: input, shape index: {}]   ;;  %s1988_s1 = inlined_call_operand.hbm [shape: f32[8,128], index: 1, kind: input, shape index: {}]   ;;  %s1989_s2 = inlined_call_operand.vmem [shape: f32[8,512], index: 2, kind: input, shape index: {}]   ;;  %s1990_s3 = inlined_call_operand.vmem [shape: f32[8,16,64], index: 3, kind: input, shape index: {}]   ;;  %s1991_s4 = inlined_call_operand.vmem [shape: f32[64,640], index: 4, kind: input, shape index: {}]   ;;  %s1992_s5 = inlined_call_operand.vmem [shape: f32[512,16], index: 5, kind: input, shape index: {}]   ;;  %s1993_s6 = inlined_call_operand.vmem [shape: f32[104,128], index: 6, kind: input, shape index: {}]   ;;  %s1994_s7 = inlined_call_operand.hbm [shape: f32[1,8,256], index: 7, kind: output, shape index: {}]  }
   0x1   :  { %13 = vsyncpa [#allocation7], 0 }
   0x2   :  { %14 = vsyncpa [#allocation5], 0  ;;  %s1425_s24 = smov [#allocation3]   ;;  %s1426_s26 = smov [#allocation6]  }
   0x3   :  { %s21_s25 = sshll.u32 %s1425_s24, 4  ;;  %s31_s27 = sshll.u32 %s1426_s26, 4  ;;  %s22_s25 = int_to_ptr.vmem [resolvable:$true] %s21_s25  ;;  %s32_s27 = int_to_ptr.vmem [resolvable:$true] %s31_s27 }
   0x4   :  { %s1353_s30 = scalar_lea.hbm %s1987_s0, 128 }
   0x5   :  { %p1354_p0 = scmp.ne.s32.totalorder %s1987_s0, %s1353_s30  ;;  %p1357_p1 = scmp.lt.u32.totalorder %s1353_s30, %s1987_s0 }
   0x7   :  { %p1359_p2 = pnand %p1357_p1, %p1354_p0 }
   0x9   :  { %1362 = shalt.err (!%p1359_p2)
}
   0xa   :  { %s1363_s12 = scalar_lea.vmem %s22_s25, 128  ;;  %p1368_p4 = scmp.lt.s32.totalorder %s22_s25, %s22_s25 }
   0xb   :  { %p1364_p3 = scmp.ne.s32.totalorder %s22_s25, %s1363_s12  ;;  %p1369_p5 = scmp.lt.s32.totalorder %s1363_s12, %s1363_s12 }
   0xd   :  { %p1370_p6 = por %p1369_p5, %p1368_p4 }
   0xf   :  { %p1371_p7 = pnand %p1370_p6, %p1364_p3 }
  0x11   :  { %1374 = shalt.err (!%p1371_p7)
}
  0x12   :  { %24 = dma.hbm_to_vmem [thread:$0]  %s1987_s0, 128, %s22_s25, [#allocation4]  }
  0x13   :  { %s1375_s17 = scalar_lea.hbm %s1988_s1, 128 }
  0x14   :  { %p1376_p8 = scmp.ne.s32.totalorder %s1988_s1, %s1375_s17  ;;  %p1379_p9 = scmp.lt.u32.totalorder %s1375_s17, %s1988_s1 }
  0x16   :  { %p1381_p10 = pnand %p1379_p9, %p1376_p8 }
  0x18   :  { %1384 = shalt.err (!%p1381_p10)
}
  0x19   :  { %s1385_s22 = scalar_lea.vmem %s32_s27, 128  ;;  %p1390_p12 = scmp.lt.s32.totalorder %s32_s27, %s32_s27 }
  0x1a   :  { %p1386_p11 = scmp.ne.s32.totalorder %s32_s27, %s1385_s22  ;;  %p1391_p13 = scmp.lt.s32.totalorder %s1385_s22, %s1385_s22 }
  0x1c   :  { %p1392_p0 = por %p1391_p13, %p1390_p12 }
  0x1e   :  { %p1393_p1 = pnand %p1392_p0, %p1386_p11 }
  0x20   :  { %1396 = shalt.err (!%p1393_p1)
}
  0x21   :  { %34 = dma.hbm_to_vmem [thread:$0]  %s1988_s1, 128, %s32_s27, [#allocation7]  }
  0x22   :  { %1419 = dma.done.wait [#allocation4], 128  }
  0x23   :  { %1420 = vsyncadd [#allocation4], 4294967168 }
  0x24   :  { %1421 = dma.done.wait [#allocation7], 128  }
  0x25   :  { %1422 = vsyncadd [#allocation7], 4294967168  ;;  %v1427_v0 = vmov 0.0   ;;  %v57_v1 = vld [vmem:[#allocation3] sm:$0xff]  ;;  %v71_v3 = vld [vmem:[%s1991_s4 + $0x30] sm:$0xff]  ;;  %s1428_s29 = smov 32  }
  0x26   :  { %173 = vmatprep.mubr.f32.mxu0 %v1427_v0  ;;  %244 = vmatprep.mubr.f32.mxu1 %v1427_v0  ;;  %v66_v2 = vld [vmem:[%s1991_s4 + $0x8] sm:$0xff]  ;;  %v65_v5 = vld [vmem:[%s1991_s4] sm:$0xff]  ;;  %v68_v7 = vld [vmem:[%s1991_s4 + $0x18] sm:$0xff]  ;;  %v1429_v54 = vmov 0.0|0.0   ;;  %vm62_vm0 = vcmask 523520   ;;  %vm105_vm1 = vcmask 523264  }
  0x27   :  { %59 = vrot.lane.b32.xlu0 %v57_v1, %s1428_s29  ;;  %v1186_v4 = vpack.c.bf16 %v71_v3, %v66_v2  ;;  %v70_v6 = vld [vmem:[%s1991_s4 + $0x28] sm:$0xff]  ;;  %v73_v9 = vld [vmem:[%s1991_s4 + $0x40] sm:$0xff]  ;;  %v67_v10 = vld [vmem:[%s1991_s4 + $0x10] sm:$0xff]  ;;  %vm1430_vm2 = vmmov 0   ;;  %vm561_vm4 = vcmask 130048   ;;  %s1432_s25 = smov 96  }
  0x28   :  { %v1188_v8 = vpack.c.bf16 %v70_v6, %v65_v5  ;;  %v72_v11 = vld [vmem:[%s1991_s4 + $0x38] sm:$0xff]  ;;  %v1202_v12 = vpack.c.bf16 %v73_v9, %v68_v7  ;;  %v81_v15 = vld [vmem:[%s1991_s4 + $0x80] sm:$0xff]  ;;  %v75_v16 = vld [vmem:[%s1991_s4 + $0x50] sm:$0xff]  ;;  %vm781_vm5 = vcmask 1041409   ;;  %vm783_vm6 = vcmask 1042434   ;;  %s1433_s17 = smov 64  }
  0x29   :  { %1187 = vmatprep.subr.bf16.mxu0 %v1186_v4  ;;  %v1204_v13 = vpack.c.bf16 %v72_v11, %v67_v10  ;;  %v76_v14 = vld [vmem:[%s1991_s4 + $0x58] sm:$0xff]  ;;  %v78_v19 = vld [vmem:[%s1991_s4 + $0x68] sm:$0xff]  ;;  %v83_v20 = vld [vmem:[%s1991_s4 + $0x90] sm:$0xff]  ;;  %vm785_vm7 = vcmask 1043459   ;;  %vm787_vm8 = vcmask 1044484   ;;  %vm789_vm9 = vcmask 1045509  }
  0x2a   :  { %1189 = vmatpush1.bf16.msra.mxu0 %v1188_v8  ;;  %v1190_v17 = vpack.c.bf16 %v81_v15, %v76_v14  ;;  %v80_v18 = vld [vmem:[%s1991_s4 + $0x78] sm:$0xff]  ;;  %1203 = vmatprep.subr.bf16.mxu1 %v1202_v12  ;;  %v1206_v22 = vpack.c.bf16 %v83_v20, %v78_v19  ;;  %v77_v23 = vld [vmem:[%s1991_s4 + $0x60] sm:$0xff]  ;;  %v82_v24 = vld [vmem:[%s1991_s4 + $0x88] sm:$0xff]  ;;  %vm791_vm10 = vcmask 1046534   ;;  %vm793_vm11 = vcmask 1047559  }
  0x2b   :  { %v1192_v21 = vpack.c.bf16 %v80_v18, %v75_v16  ;;  %v86_v25 = vld [vmem:[%s1991_s4 + $0xa8] sm:$0xff]  ;;  %1205 = vmatpush1.bf16.msra.mxu1 %v1204_v13  ;;  %v1208_v26 = vpack.c.bf16 %v82_v24, %v77_v23  ;;  %v91_v27 = vld [vmem:[%s1991_s4 + $0xd0] sm:$0xff]  ;;  %v85_v29 = vld [vmem:[%s1991_s4 + $0xa0] sm:$0xff]  ;;  %vm905_vm12 = vcmask 261120   ;;  %vm911_vm13 = vcmask 785920  }
  0x2c   :  { %1191 = vmatprep.subr.bf16.mxu0 %v1190_v17  ;;  %v55_v28 = vld [vmem:[#allocation6] sm:$0xff]  ;;  %1207 = vmatprep.subr.bf16.mxu1 %v1206_v22  ;;  %v1194_v30 = vpack.c.bf16 %v91_v27, %v86_v25  ;;  %v90_v31 = vld [vmem:[%s1991_s4 + $0xc8] sm:$0xff]  ;;  %v88_v32 = vld [vmem:[%s1991_s4 + $0xb8] sm:$0xff]  ;;  %vm1014_vm14 = vcmask 785408  }
  0x2d   :  { %56 = vst [vmem:[#allocation2] sm:$0xff] %v55_v28  ;;  %v93_v33 = vld [vmem:[%s1991_s4 + $0xe0] sm:$0xff]  ;;  %v1196_v34 = vpack.c.bf16 %v90_v31, %v85_v29  ;;  %v87_v36 = vld [vmem:[%s1991_s4 + $0xb0] sm:$0xff]  ;;  %v92_v37 = vld [vmem:[%s1991_s4 + $0xd8] sm:$0xff] }
  0x2e   :  { %1193 = vmatpush1.bf16.msra.mxu0 %v1192_v21  ;;  %v1210_v35 = vpack.c.bf16 %v93_v33, %v88_v32  ;;  %v96_v38 = vld [vmem:[%s1991_s4 + $0xf8] sm:$0xff]  ;;  %v101_v39 = vld [vmem:[%s1991_s4 + $0x120] sm:$0xff]  ;;  %v95_v40 = vld [vmem:[%s1991_s4 + $0xf0] sm:$0xff]  ;;  %v1212_v42 = vpack.c.bf16 %v92_v37, %v87_v36 }
  0x2f   :  { %1195 = vmatprep.subr.bf16.mxu0 %v1194_v30  ;;  %v100_v41 = vld [vmem:[%s1991_s4 + $0x118] sm:$0xff]  ;;  %1209 = vmatpush1.bf16.msra.mxu1 %v1208_v26  ;;  %v1198_v43 = vpack.c.bf16 %v101_v39, %v96_v38  ;;  %v98_v44 = vld [vmem:[%s1991_s4 + $0x108] sm:$0xff]  ;;  %v103_v45 = vld [vmem:[%s1991_s4 + $0x130] sm:$0xff] }
  0x30   :  { %1211 = vmatprep.subr.bf16.mxu1 %v1210_v35  ;;  %v1214_v46 = vpack.c.bf16 %v103_v45, %v98_v44  ;;  %v97_v47 = vld [vmem:[%s1991_s4 + $0x100] sm:$0xff]  ;;  %v102_v48 = vld [vmem:[%s1991_s4 + $0x128] sm:$0xff]  ;;  %v1200_v49 = vpack.c.bf16 %v100_v41, %v95_v40  ;;  %v351_v60 = vld [vmem:[%s1992_s5 + $0x90] sm:$0xff] }
  0x31   :  { %v1216_v50 = vpack.c.bf16 %v102_v48, %v97_v47  ;;  %v349_v51 = vld [vmem:[%s1992_s5 + $0x80] sm:$0xff]  ;;  %v350_v52 = vld [vmem:[%s1992_s5 + $0x88] sm:$0xff]  ;;  %v352_v61 = vld [vmem:[%s1992_s5 + $0x98] sm:$0xff] }
  0x32   :  { %1197 = vmatpush1.bf16.msra.mxu0 %v1196_v34  ;;  %v1230_v53 = vpack.c.bf16 %v350_v52, %v349_v51  ;;  %v69_v56 = vld [vmem:[%s1991_s4 + $0x20] sm:$0xff]  ;;  %v74_v57 = vld [vmem:[%s1991_s4 + $0x48] sm:$0xff]  ;;  %v79_v63 = vld [vmem:[%s1991_s4 + $0x70] sm:$0xff]  ;;  %v1234_v4 = vpack.c.bf16 %v352_v61, %v351_v60 }
  0x33   :  { %1199 = vmatprep.subr.bf16.mxu0 %v1198_v43  ;;  %1213 = vmatpush1.bf16.msra.mxu1 %v1212_v42  ;;  %v333_v58 = vld [vmem:[%s1992_s5] sm:$0xff]  ;;  %v334_v59 = vld [vmem:[%s1992_s5 + $0x8] sm:$0xff]  ;;  %v1219_v62 = vpack.c.bf16 %v74_v57, %v69_v56  ;;  %v84_v1 = vld [vmem:[%s1991_s4 + $0x98] sm:$0xff] }
  0x34   :  { %1215 = vmatprep.subr.bf16.mxu1 %v1214_v46  ;;  %v1232_v2 = vpack.c.bf16 %v334_v59, %v333_v58  ;;  %v335_v5 = vld [vmem:[%s1992_s5 + $0x10] sm:$0xff]  ;;  %v336_v6 = vld [vmem:[%s1992_s5 + $0x18] sm:$0xff]  ;;  %v353_v7 = vld [vmem:[%s1992_s5 + $0xa0] sm:$0xff]  ;;  %v1222_v9 = vpack.c.bf16 %v84_v1, %v79_v63 }
  0x35   :  { %v354_v8 = vld [vmem:[%s1992_s5 + $0xa8] sm:$0xff]  ;;  %v89_v10 = vld [vmem:[%s1991_s4 + $0xc0] sm:$0xff]  ;;  %v1236_v12 = vpack.c.bf16 %v336_v6, %v335_v5  ;;  %v355_v16 = vld [vmem:[%s1992_s5 + $0xb0] sm:$0xff] }
  0x36   :  { %1201 = vmatpush1.bf16.msra.mxu0 %v1200_v49  ;;  %v94_v11 = vld [vmem:[%s1991_s4 + $0xe8] sm:$0xff]  ;;  %v1238_v13 = vpack.c.bf16 %v354_v8, %v353_v7  ;;  %v337_v14 = vld [vmem:[%s1992_s5 + $0x20] sm:$0xff]  ;;  %v356_v17 = vld [vmem:[%s1992_s5 + $0xb8] sm:$0xff] }
  0x37   :  { %1218 = vmatprep.subr.bf16.mxu0 %v1429_v54  ;;  %1217 = vmatpush1.bf16.msra.mxu1 %v1216_v50  ;;  %v338_v15 = vld [vmem:[%s1992_s5 + $0x28] sm:$0xff]  ;;  %v1225_v18 = vpack.c.bf16 %v94_v11, %v89_v10  ;;  %v99_v19 = vld [vmem:[%s1991_s4 + $0x110] sm:$0xff]  ;;  %v104_v20 = vld [vmem:[%s1991_s4 + $0x138] sm:$0xff]  ;;  %v1242_v23 = vpack.c.bf16 %v356_v17, %v355_v16 }
  0x38   :  { %1231 = vmatprep.subr.bf16.mxu1 %v1230_v53  ;;  %v1240_v21 = vpack.c.bf16 %v338_v15, %v337_v14  ;;  %v339_v22 = vld [vmem:[%s1992_s5 + $0x30] sm:$0xff]  ;;  %v340_v24 = vld [vmem:[%s1992_s5 + $0x38] sm:$0xff]  ;;  %v381_v25 = vld [vmem:[%s1992_s5 + $0x180] sm:$0xff]  ;;  %v1228_v29 = vpack.c.bf16 %v104_v20, %v99_v19 }
  0x39   :  { %v382_v26 = vld [vmem:[%s1992_s5 + $0x188] sm:$0xff]  ;;  %v357_v27 = vld [vmem:[%s1992_s5 + $0xc0] sm:$0xff]  ;;  %v1244_v30 = vpack.c.bf16 %v340_v24, %v339_v22  ;;  %v383_v39 = vld [vmem:[%s1992_s5 + $0x190] sm:$0xff] }
  0x3a   :  { %v358_v28 = vld [vmem:[%s1992_s5 + $0xc8] sm:$0xff]  ;;  %v1262_v31 = vpack.c.bf16 %v382_v26, %v381_v25  ;;  %v365_v32 = vld [vmem:[%s1992_s5 + $0x100] sm:$0xff]  ;;  %v384_v40 = vld [vmem:[%s1992_s5 + $0x198] sm:$0xff] }
  0x3b   :  { %v366_v33 = vld [vmem:[%s1992_s5 + $0x108] sm:$0xff]  ;;  %v1246_v34 = vpack.c.bf16 %v358_v28, %v357_v27  ;;  %v341_v36 = vld [vmem:[%s1992_s5 + $0x40] sm:$0xff]  ;;  %v1266_v41 = vpack.c.bf16 %v384_v40, %v383_v39  ;;  %v359_v42 = vld [vmem:[%s1992_s5 + $0xd0] sm:$0xff] }
  0x3c   :  { %v1264_v35 = vpack.c.bf16 %v366_v33, %v365_v32  ;;  %v342_v37 = vld [vmem:[%s1992_s5 + $0x48] sm:$0xff]  ;;  %v360_v43 = vld [vmem:[%s1992_s5 + $0xd8] sm:$0xff]  ;;  %v367_v44 = vld [vmem:[%s1992_s5 + $0x110] sm:$0xff] }
  0x3d   :  { %v1248_v38 = vpack.c.bf16 %v342_v37, %v341_v36  ;;  %v1250_v45 = vpack.c.bf16 %v360_v43, %v359_v42  ;;  %v368_v46 = vld [vmem:[%s1992_s5 + $0x118] sm:$0xff]  ;;  %v343_v48 = vld [vmem:[%s1992_s5 + $0x50] sm:$0xff]  ;;  %v385_v51 = vld [vmem:[%s1992_s5 + $0x1a0] sm:$0xff] }
  0x3e   :  { %v1268_v47 = vpack.c.bf16 %v368_v46, %v367_v44  ;;  %v344_v49 = vld [vmem:[%s1992_s5 + $0x58] sm:$0xff]  ;;  %v386_v52 = vld [vmem:[%s1992_s5 + $0x1a8] sm:$0xff]  ;;  %v369_v57 = vld [vmem:[%s1992_s5 + $0x120] sm:$0xff] }
  0x3f   :  { %v1252_v50 = vpack.c.bf16 %v344_v49, %v343_v48  ;;  %v1270_v53 = vpack.c.bf16 %v386_v52, %v385_v51  ;;  %v362_v56 = vld [vmem:[%s1992_s5 + $0xe8] sm:$0xff]  ;;  %v345_v60 = vld [vmem:[%s1992_s5 + $0x60] sm:$0xff]  ;;  %v387_v1 = vld [vmem:[%s1992_s5 + $0x1b0] sm:$0xff] }
  0x40   :  { %v370_v59 = vld [vmem:[%s1992_s5 + $0x128] sm:$0xff]  ;;  %v364_v6 = vld [vmem:[%s1992_s5 + $0xf8] sm:$0xff]  ;;  %v371_v7 = vld [vmem:[%s1992_s5 + $0x130] sm:$0xff] }
  0x41   :  { %v346_v61 = vld [vmem:[%s1992_s5 + $0x68] sm:$0xff]  ;;  %v372_v8 = vld [vmem:[%s1992_s5 + $0x138] sm:$0xff]  ;;  %v347_v11 = vld [vmem:[%s1992_s5 + $0x70] sm:$0xff] }
  0x42   :  { %v1256_v63 = vpack.c.bf16 %v346_v61, %v345_v60  ;;  %v1276_v10 = vpack.c.bf16 %v372_v8, %v371_v7  ;;  %v389_v14 = vld [vmem:[%s1992_s5 + $0x1c0] sm:$0xff]  ;;  %v390_v15 = vld [vmem:[%s1992_s5 + $0x1c8] sm:$0xff]  ;;  %v391_v20 = vld [vmem:[%s1992_s5 + $0x1d0] sm:$0xff]  ;;  %v544_v8 = vlaneseq }
  0x43   :  { %v1278_v16 = vpack.c.bf16 %v390_v15, %v389_v14  ;;  %v373_v17 = vld [vmem:[%s1992_s5 + $0x140] sm:$0xff]  ;;  %v376_v24 = vld [vmem:[%s1992_s5 + $0x158] sm:$0xff]  ;;  %v394_v27 = vld [vmem:[%s1992_s5 + $0x1e8] sm:$0xff] }
  0x44   :  { %v393_v26 = vld [vmem:[%s1992_s5 + $0x1e0] sm:$0xff]  ;;  %v396_v32 = vld [vmem:[%s1992_s5 + $0x1f8] sm:$0xff] }
  0x45   :  { %v377_v28 = vld [vmem:[%s1992_s5 + $0x160] sm:$0xff]  ;;  %v380_v36 = vld [vmem:[%s1992_s5 + $0x178] sm:$0xff] }
  0x46   :  { %v321_v39 = vld [vmem:[%s1989_s2] sm:$0xff]  ;;  %v324_v49 = vld [vmem:[%s1989_s2 + $0x18] sm:$0xff] }
  0x99   :  { %v60_v55 = vpop.permute.xlu0 %59 }
  0x9a   :  { %63 = vst.msk [vmem:[#allocation2] sm:$0xff] %vm62_vm0, %v60_v55  ;;  %v361_v55 = vld [vmem:[%s1992_s5 + $0xe0] sm:$0xff] }
  0x9b   :  { %v1254_v58 = vpack.c.bf16 %v362_v56, %v361_v55 }
  0xa1   :  { %v1629_v3 = vld [vmem:[#allocation2] sm:$0xff] }
  0xa2   :  { %1035 = vmatmul.mubr.msk.f32.vlgmr.msra.gmra.mrb[0].mxu0 %vm105_vm1, %v1629_v3  ;;  %1036 = vmatmul.mubr.msk.f32.vlgmr.msra.gmra.mrb[0].mxu1 %vm105_vm1, %v1629_v3 }
  0xa3   :  { %1220 = vmatpush3.bf16.msra.mxu0 %v1219_v62  ;;  %1153 = vmatprep.mubr.msk.f32.mxu0 %vm1430_vm2, %v1427_v0  ;;  %v1272_v62 = vpack.c.bf16 %v370_v59, %v369_v57  ;;  %v1431_v57 = vmov 15  }
  0xa4   :  { %1221 = vmatprep.subr.bf16.mxu0 %v1429_v54  ;;  %1233 = vmatpush3.bf16.msra.mxu1 %v1232_v2  ;;  %v388_v2 = vld [vmem:[%s1992_s5 + $0x1b8] sm:$0xff] }
  0xa5   :  { %1235 = vmatprep.subr.bf16.mxu1 %v1234_v4  ;;  %v363_v4 = vld [vmem:[%s1992_s5 + $0xf0] sm:$0xff]  ;;  %v1274_v5 = vpack.c.bf16 %v388_v2, %v387_v1  ;;  %1322 = vset.pattern.permute.xlu0 %v1431_v57 }
  0xa7   :  { %1223 = vmatpush3.bf16.msra.mxu0 %v1222_v9  ;;  %v1258_v9 = vpack.c.bf16 %v364_v6, %v363_v4 }
  0xa8   :  { %1224 = vmatprep.subr.bf16.mxu0 %v1429_v54  ;;  %1237 = vmatpush3.bf16.msra.mxu1 %v1236_v12  ;;  %v348_v12 = vld [vmem:[%s1992_s5 + $0x78] sm:$0xff] }
  0xa9   :  { %1239 = vmatprep.subr.bf16.mxu1 %v1238_v13  ;;  %v1260_v13 = vpack.c.bf16 %v348_v12, %v347_v11 }
  0xab   :  { %1226 = vmatpush3.bf16.msra.mxu0 %v1225_v18  ;;  %v374_v18 = vld [vmem:[%s1992_s5 + $0x148] sm:$0xff] }
  0xac   :  { %1227 = vmatprep.subr.bf16.mxu0 %v1429_v54  ;;  %1241 = vmatpush3.bf16.msra.mxu1 %v1240_v21  ;;  %v1280_v19 = vpack.c.bf16 %v374_v18, %v373_v17  ;;  %v392_v21 = vld [vmem:[%s1992_s5 + $0x1d8] sm:$0xff] }
  0xad   :  { %1243 = vmatprep.subr.bf16.mxu1 %v1242_v23  ;;  %v1282_v22 = vpack.c.bf16 %v392_v21, %v391_v20  ;;  %v375_v23 = vld [vmem:[%s1992_s5 + $0x150] sm:$0xff] }
  0xae   :  { %v1284_v25 = vpack.c.bf16 %v376_v24, %v375_v23 }
  0xaf   :  { %1229 = vmatpush3.bf16.msra.mxu0 %v1228_v29  ;;  %v1286_v29 = vpack.c.bf16 %v394_v27, %v393_v26 }
  0xb0   :  { %1245 = vmatpush3.bf16.msra.mxu1 %v1244_v30  ;;  %1263 = vmatprep.subr.bf16.mxu0 %v1262_v31  ;;  %v378_v30 = vld [vmem:[%s1992_s5 + $0x168] sm:$0xff]  ;;  %v395_v31 = vld [vmem:[%s1992_s5 + $0x1f0] sm:$0xff] }
  0xb1   :  { %1247 = vmatprep.subr.bf16.mxu1 %v1246_v34  ;;  %v1288_v33 = vpack.c.bf16 %v378_v30, %v377_v28  ;;  %v1290_v34 = vpack.c.bf16 %v396_v32, %v395_v31 }
  0xb2   :  { %1154 = vmatmul.mubr.msk.f32.vlgmr.msra.gmra.mrb[2].mxu0 %vm105_vm1, %v1629_v3 }
  0xb3   :  { %1265 = vmatpush3.bf16.msra.mxu0 %v1264_v35  ;;  %v379_v35 = vld [vmem:[%s1992_s5 + $0x170] sm:$0xff] }
  0xb4   :  { %1249 = vmatpush3.bf16.msra.mxu1 %v1248_v38  ;;  %1267 = vmatprep.subr.bf16.mxu0 %v1266_v41  ;;  %v1292_v37 = vpack.c.bf16 %v380_v36, %v379_v35  ;;  %v322_v38 = vld [vmem:[%s1989_s2 + $0x8] sm:$0xff] }
  0xb5   :  { %1251 = vmatprep.subr.bf16.mxu1 %v1250_v45 }
  0xb7   :  { %1269 = vmatpush3.bf16.msra.mxu0 %v1268_v47  ;;  %v323_v47 = vld [vmem:[%s1989_s2 + $0x10] sm:$0xff] }
  0xb8   :  { %1253 = vmatpush3.bf16.msra.mxu1 %v1252_v50  ;;  %1271 = vmatprep.subr.bf16.mxu0 %v1270_v53 }
  0xb9   :  { %1255 = vmatprep.subr.bf16.mxu1 %v1254_v58 }
  0xbb   :  { %1273 = vmatpush3.bf16.msra.mxu0 %v1272_v62 }
  0xbc   :  { %1257 = vmatpush3.bf16.msra.mxu1 %v1256_v63  ;;  %1275 = vmatprep.subr.bf16.mxu0 %v1274_v5 }
  0xbd   :  { %1259 = vmatprep.subr.bf16.mxu1 %v1258_v9  ;;  %v545_v9 = vand.u32 127, %v544_v8 }
  0xbf   :  { %1277 = vmatpush3.bf16.msra.mxu0 %v1276_v10  ;;  %vm558_vm3 = vcmp.lt.s32.totalorder %v545_v9, 15 }
  0xc0   :  { %1261 = vmatpush3.bf16.msra.mxu1 %v1260_v13  ;;  %1279 = vmatprep.subr.bf16.mxu0 %v1278_v16 }
  0xc1   :  { %1294 = vmatprep.subr.bf16.mxu1 %v1429_v54 }
  0xc3   :  { %1281 = vmatpush3.bf16.msra.mxu0 %v1280_v19 }
  0xc4   :  { %1283 = vmatprep.subr.bf16.mxu0 %v1282_v22 }
  0xc7   :  { %1285 = vmatpush3.bf16.msra.mxu0 %v1284_v25  ;;  %v574_v25 = vshrl.u32 %v544_v8, 7 }
  0xc8   :  { %1287 = vmatprep.subr.bf16.mxu0 %v1286_v29 }
  0xc9   :  { %v575_v26 = vsub.s32 0, %v574_v25  ;;  %v586_v30 = vsub.s32 1, %v574_v25  ;;  %v597_v31 = vsub.s32 2, %v574_v25  ;;  %v608_v35 = vsub.s32 3, %v574_v25 }
  0xcb   :  { %1289 = vmatpush3.bf16.msra.mxu0 %v1288_v33 }
  0xcc   :  { %1291 = vmatprep.subr.bf16.mxu0 %v1290_v34 }
  0xcf   :  { %1293 = vmatpush3.bf16.msra.mxu0 %v1292_v37  ;;  %v619_v37 = vsub.s32 4, %v574_v25 }
  0xd0   :  { %1306 = vmatprep.subr.bf16.mxu0 %v1429_v54 }
 0x175   :  { %v1836_v40 = vpop.f32.mrb[0].mxu0  ;;  %v246_v41 = vpop.f32.mrb[0].mxu1 }
 0x176   :  { %v326_v42 = vadd.f32 %v322_v38, %v246_v41  ;;  %v177_v43 = vpop.f32.mrb[1].mxu0  ;;  %v248_v44 = vpop.f32.mrb[1].mxu1 }
 0x177   :  { %v325_v45 = vadd.f32 %v321_v39, %v177_v43  ;;  %v327_v50 = vadd.f32 %v323_v47, %v248_v44  ;;  %v630_v39 = vsub.s32 5, %v574_v25  ;;  %v652_v44 = vsub.s32 7, %v574_v25 }
 0x178   :  { %1323 = vtanh.f32 %v326_v42  ;;  %v641_v42 = vsub.s32 6, %v574_v25  ;;  %v670_v25 = vld [vmem:[%s1990_s3 + $0x48] sm:$0xff] }
 0x179   :  { %1325 = vtanh.f32 %v325_v45  ;;  %v765_v45 = vld [vmem:[%s1993_s6] sm:$0xff] }
 0x182   :  { %v1324_v46 = vpop.eup %1323 }
 0x183   :  { %v1326_v48 = vpop.eup %1325  ;;  %461 = vmatprep.mubr.f32.mxu1 %v1324_v46  ;;  %v766_v46 = vld [vmem:[%s1993_s6 + $0x8] sm:$0xff] }
 0x184   :  { %462 = vmatmul.mubr.f32.vlgmr.msra.gmra.mrb[2].mxu1 %v1326_v48  ;;  %v1295_v47 = vpack.c.bf16 %v766_v46, %v765_v45  ;;  %v671_v45 = vld [vmem:[%s1990_s3 + $0x50] sm:$0xff] }
 0x185   :  { %v317_v51 = vpop.f32.mrb[2].mxu0  ;;  %1172 = vmatprep.mubr.msk.f32.mxu1 %vm1430_vm2, %v1427_v0 }
 0x186   :  { %v328_v52 = vadd.f32 %v324_v49, %v317_v51  ;;  %v1155_v53 = vpop.f32.mrb[3].mxu0  ;;  %1296 = vmatpush3.bf16.msra.mxu1 %v1295_v47  ;;  %v767_v49 = vld [vmem:[%s1993_s6 + $0x10] sm:$0xff] }
 0x187   :  { %1297 = vmatprep.subr.bf16.mxu1 %v1429_v54  ;;  %v770_v53 = vld [vmem:[%s1993_s6 + $0x28] sm:$0xff] }
 0x188   :  { %1327 = vtanh.f32 %v328_v52  ;;  %v769_v52 = vld [vmem:[%s1993_s6 + $0x20] sm:$0xff] }
 0x189   :  { %1329 = vtanh.f32 %v327_v50  ;;  %v768_v50 = vld [vmem:[%s1993_s6 + $0x18] sm:$0xff] }
 0x18a   :  { %v1298_v51 = vpack.c.bf16 %v768_v50, %v767_v49 }
 0x18c   :  { %1299 = vmatpush3.bf16.msra.mxu1 %v1298_v51  ;;  %v674_v51 = vld [vmem:[%s1990_s3 + $0x68] sm:$0xff] }
 0x18d   :  { %1300 = vmatprep.subr.bf16.mxu1 %v1429_v54 }
 0x192   :  { %v1328_v55 = vpop.eup %1327 }
 0x193   :  { %v1330_v56 = vpop.eup %1329  ;;  %531 = vmatprep.mubr.f32.mxu0 %v1328_v55  ;;  %v1301_v55 = vpack.c.bf16 %v770_v53, %v769_v52 }
 0x194   :  { %532 = vmatmul.mubr.f32.vlgmr.msra.gmra.mrb[4].mxu0 %v1330_v56  ;;  %v771_v56 = vld [vmem:[%s1993_s6 + $0x30] sm:$0xff] }
 0x195   :  { %1183 = vmatprep.mubr.msk.f32.mxu0 %vm1430_vm2, %v1427_v0  ;;  %v546_v0 = vcvt.s32.f32 %v545_v9  ;;  %1302 = vmatpush3.bf16.msra.mxu1 %v1301_v55  ;;  %v665_v9 = vld [vmem:[%s1990_s3 + $0x20] sm:$0xff] }
 0x196   :  { %1303 = vmatprep.subr.bf16.mxu1 %v1429_v54 }
 0x257   :  { %v1085_v58 = vpop.f32.mrb[2].mxu1 }
 0x258   :  { %v1086_v59 = vpop.f32.mrb[3].mxu1 }
 0x259   :  { %v1087_v60 = vadd.f32 %v1086_v59, %v1085_v58 }
 0x267   :  { %v1120_v61 = vpop.f32.mrb[4].mxu0 }
 0x268   :  { %v1121_v62 = vpop.f32.mrb[5].mxu0 }
 0x269   :  { %v1122_v63 = vadd.f32 %v1121_v62, %v1120_v61  ;;  %v664_v62 = vld [vmem:[%s1990_s3 + $0x18] sm:$0xff] }
 0x26b   :  { %v534_v1 = vadd.f32 %v1122_v63, %v1087_v60  ;;  %v662_v63 = vld [vmem:[%s1990_s3 + $0x8] sm:$0xff] }
 0x26d   :  { %v1038_v2 = vmul.f32 -1.442695, %v534_v1 }
 0x26f   :  { %1331 = vpow2.f32 %v1038_v2  ;;  %v663_v2 = vld [vmem:[%s1990_s3 + $0x10] sm:$0xff] }
 0x279   :  { %v1332_v4 = vpop.eup %1331 }
 0x27a   :  { %v540_v5 = vadd.f32 1.0, %v1332_v4 }
 0x27c   :  { %1333 = vrcp.f32 %v540_v5 }
 0x286   :  { %v1334_v6 = vpop.eup %1333 }
 0x287   :  { %v543_v7 = vmul.f32 15.0, %v1334_v6  ;;  %v666_v6 = vld [vmem:[%s1990_s3 + $0x28] sm:$0xff] }
 0x289   :  { %549 = vperm.xlu0 %1322, %v543_v7  }
 0x308   :  { %v550_v10 = vpop.permute.xlu0 %549 }
 0x309   :  { %v552_v11 = vsub.f32 %v546_v0, %v550_v10 }
 0x30b   :  { %v553_v12 = vmul.f32 %v552_v11, %v552_v11 }
 0x30d   :  { %v555_v13 = vmul.f32 0.16, %v553_v12  ;;  %v668_v12 = vld [vmem:[%s1990_s3 + $0x38] sm:$0xff] }
 0x30f   :  { %v556_v14 = vmul.f32 1.442695, %v555_v13 }
 0x311   :  { %1335 = vpow2.f32 %v556_v14 }
 0x31b   :  { %v1336_v15 = vpop.eup %1335 }
 0x31c   :  { %v559_v16 = vmul.f32 %v1336_v15, %v534_v1  ;;  %v661_v1 = vld [vmem:[%s1990_s3] sm:$0xff] }
 0x31e   :  { %v560_v17 = vsel %vm558_vm3, %v559_v16, -1e+30 }
 0x31f   :  { %v562_v18 = vsel %vm561_vm4, %v560_v17, -inf }
 0x320   :  { %563 = vmax.xlane.f32.xlu1 %v562_v18  ;;  %v667_v18 = vld [vmem:[%s1990_s3 + $0x30] sm:$0xff] }
 0x3ad   :  { %v564_v19 = vpop.xlane.xlu1 %563 }
 0x3ae   :  { %v565_v20 = vsub.f32 %v560_v17, %v564_v19 }
 0x3b0   :  { %v566_v21 = vmul.f32 1.442695, %v565_v20 }
 0x3b2   :  { %1337 = vpow2.f32 %v566_v21 }
 0x3bc   :  { %v1338_v22 = vpop.eup %1337 }
 0x3bd   :  { %v568_v23 = vsel %vm561_vm4, %v1338_v22, 0.0 }
 0x3be   :  { %569 = vadd.xlane.f32.xlu1 %v568_v23 }
 0x44b   :  { %v570_v24 = vpop.xlane.xlu1 %569 }
 0x44c   :  { %1339 = vrcp.f32 %v570_v24 }
 0x456   :  { %v1340_v27 = vpop.eup %1339 }
 0x457   :  { %v572_v28 = vmul.f32 %v1340_v27, %v1338_v22 }
 0x459   :  { %v576_v29 = vrot.slane %v572_v28, %v575_v26  ;;  %v1016_v32 = vsel %vm561_vm4, %v572_v28, 0.0  ;;  %v587_v33 = vrot.slane %v572_v28, %v586_v30  ;;  %v598_v34 = vrot.slane %v572_v28, %v597_v31  ;;  %v669_v31 = vld [vmem:[%s1990_s3 + $0x40] sm:$0xff] }
 0x45a   :  { %1018 = vst [vmem:[#allocation8 + $0x8] sm:$0xff] %v1016_v32  ;;  %v609_v36 = vrot.slane %v572_v28, %v608_v35  ;;  %v620_v38 = vrot.slane %v572_v28, %v619_v37  ;;  %v631_v41 = vrot.slane %v572_v28, %v630_v39  ;;  %v642_v43 = vrot.slane %v572_v28, %v641_v42  ;;  %v672_v37 = vld [vmem:[%s1990_s3 + $0x58] sm:$0xff] }
 0x45b   :  { %582 = vbcast.lane.b32.xlu0 %v576_v29, 264  ;;  %578 = vbcast.lane.b32.xlu1 %v576_v29, 256  ;;  %v653_v48 = vrot.slane %v572_v28, %v652_v44 }
 0x45f   :  { %589 = vbcast.lane.b32.xlu0 %v587_v33, 256  ;;  %604 = vbcast.lane.b32.xlu1 %v598_v34, 264 }
 0x463   :  { %593 = vbcast.lane.b32.xlu0 %v587_v33, 264  ;;  %615 = vbcast.lane.b32.xlu1 %v609_v36, 264 }
 0x467   :  { %600 = vbcast.lane.b32.xlu0 %v598_v34, 256  ;;  %626 = vbcast.lane.b32.xlu1 %v620_v38, 264 }
 0x46b   :  { %611 = vbcast.lane.b32.xlu0 %v609_v36, 256  ;;  %637 = vbcast.lane.b32.xlu1 %v631_v41, 264 }
 0x46f   :  { %622 = vbcast.lane.b32.xlu0 %v620_v38, 256  ;;  %648 = vbcast.lane.b32.xlu1 %v642_v43, 264 }
 0x473   :  { %633 = vbcast.lane.b32.xlu0 %v631_v41, 256  ;;  %659 = vbcast.lane.b32.xlu1 %v653_v48, 264 }
 0x477   :  { %644 = vbcast.lane.b32.xlu0 %v642_v43, 256  ;;  %881 = vrot.lane.b32.xlu1 %v1629_v3, %s1432_s25  ;;  %v772_v3 = vld [vmem:[%s1993_s6 + $0x38] sm:$0xff] }
 0x478   :  { %v1304_v57 = vpack.c.bf16 %v772_v3, %v771_v56 }
 0x47a   :  { %1305 = vmatpush3.bf16.msra.mxu1 %v1304_v57 }
 0x47b   :  { %655 = vbcast.lane.b32.xlu0 %v653_v48, 256 }
 0x4cd   :  { %v583_v58 = vpop.permute.xlu0 %582  ;;  %v579_v59 = vpop.permute.xlu1 %578 }
 0x4ce   :  { %v678_v8 = vmul.f32 %v662_v63, %v583_v58  ;;  %v677_v0 = vmul.f32 %v661_v1, %v579_v59  ;;  %v673_v58 = vld [vmem:[%s1990_s3 + $0x60] sm:$0xff] }
 0x4d0   :  { %v694_v17 = vsel %vm105_vm1, %v678_v8, 0.0  ;;  %v693_v19 = vsel %vm105_vm1, %v677_v0, 0.0 }
 0x4d1   :  { %v590_v60 = vpop.permute.xlu0 %589  ;;  %v605_v61 = vpop.permute.xlu1 %604  ;;  %v695_v30 = vadd.f32 %v694_v17, %v693_v19 }
 0x4d2   :  { %v679_v10 = vmul.f32 %v663_v2, %v590_v60  ;;  %v682_v11 = vmul.f32 %v666_v6, %v605_v61  ;;  %v676_v2 = vld [vmem:[%s1990_s3 + $0x78] sm:$0xff] }
 0x4d3   :  { %v696_v42 = vrot.slane %v695_v30, 4 }
 0x4d4   :  { %v702_v20 = vsel %vm105_vm1, %v679_v10, 0.0  ;;  %v712_v23 = vsel %vm105_vm1, %v682_v11, 0.0  ;;  %v675_v10 = vld [vmem:[%s1990_s3 + $0x70] sm:$0xff] }
 0x4d5   :  { %v594_v4 = vpop.permute.xlu0 %593  ;;  %v616_v5 = vpop.permute.xlu1 %615  ;;  %v697_v56 = vadd.f32 %v696_v42, %v695_v30 }
 0x4d6   :  { %v680_v7 = vmul.f32 %v664_v62, %v594_v4  ;;  %v684_v21 = vmul.f32 %v668_v12, %v616_v5 }
 0x4d7   :  { %v698_v8 = vrot.slane %v697_v56, 2 }
 0x4d8   :  { %v703_v15 = vsel %vm105_vm1, %v680_v7, 0.0  ;;  %v721_v32 = vsel %vm105_vm1, %v684_v21, 0.0 }
 0x4d9   :  { %v601_v13 = vpop.permute.xlu0 %600  ;;  %v627_v14 = vpop.permute.xlu1 %626  ;;  %v704_v24 = vadd.f32 %v703_v15, %v702_v20  ;;  %v699_v21 = vadd.f32 %v698_v8, %v697_v56 }
 0x4da   :  { %v681_v16 = vmul.f32 %v665_v9, %v601_v13  ;;  %v686_v33 = vmul.f32 %v670_v25, %v627_v14 }
 0x4db   :  { %v705_v35 = vrot.slane %v704_v24, 4 }
 0x4dc   :  { %v711_v22 = vsel %vm105_vm1, %v681_v16, 0.0  ;;  %v730_v46 = vsel %vm105_vm1, %v686_v33, 0.0  ;;  %v700_v33 = vrot.slane %v699_v21, 1 }
 0x4dd   :  { %v612_v26 = vpop.permute.xlu0 %611  ;;  %v638_v27 = vpop.permute.xlu1 %637  ;;  %v713_v28 = vadd.f32 %v712_v23, %v711_v22  ;;  %v706_v49 = vadd.f32 %v705_v35, %v704_v24 }
 0x4de   :  { %v683_v29 = vmul.f32 %v667_v18, %v612_v26  ;;  %v688_v47 = vmul.f32 %v672_v37, %v638_v27 }
 0x4df   :  { %v714_v39 = vrot.slane %v713_v28, 4  ;;  %v707_v62 = vrot.slane %v706_v49, 2 }
 0x4e0   :  { %v720_v34 = vsel %vm105_vm1, %v683_v29, 0.0  ;;  %v739_v59 = vsel %vm105_vm1, %v688_v47, 0.0 }
 0x4e1   :  { %v722_v36 = vadd.f32 %v721_v32, %v720_v34  ;;  %v623_v38 = vpop.permute.xlu0 %622  ;;  %v649_v44 = vpop.permute.xlu1 %648  ;;  %v715_v53 = vadd.f32 %v714_v39, %v713_v28  ;;  %v708_v15 = vadd.f32 %v707_v62, %v706_v49  ;;  %v1040_v62 = vld [vmem:[%s1993_s6 + $0x60] ss:$0 sm:$0xff] }
 0x4e2   :  { %v685_v41 = vmul.f32 %v669_v31, %v623_v38  ;;  %v690_v60 = vmul.f32 %v674_v51, %v649_v44  ;;  %v701_v44 = vadd.f32 %v700_v33, %v699_v21 }
 0x4e3   :  { %v723_v43 = vrot.slane %v722_v36, 4  ;;  %v716_v6 = vrot.slane %v715_v53, 2  ;;  %v709_v28 = vrot.slane %v708_v15, 1 }
 0x4e4   :  { %v729_v48 = vsel %vm105_vm1, %v685_v41, 0.0  ;;  %v748_v12 = vsel %vm105_vm1, %v690_v60, 0.0 }
 0x4e5   :  { %v731_v50 = vadd.f32 %v730_v46, %v729_v48  ;;  %v634_v52 = vpop.permute.xlu0 %633  ;;  %v724_v3 = vadd.f32 %v723_v43, %v722_v36  ;;  %v660_v4 = vpop.permute.xlu1 %659  ;;  %v717_v19 = vadd.f32 %v716_v6, %v715_v53  ;;  %v710_v38 = vadd.f32 %v709_v28, %v708_v15  ;;  %v915_v15 = vld [vmem:[%s1993_s6 + $0x50] sm:$0xff] }
 0x4e6   :  { %v687_v55 = vmul.f32 %v671_v45, %v634_v52  ;;  %v692_v13 = vmul.f32 %v676_v2, %v660_v4 }
 0x4e7   :  { %v732_v57 = vrot.slane %v731_v50, 4  ;;  %v725_v9 = vrot.slane %v724_v3, 2  ;;  %v718_v32 = vrot.slane %v717_v19, 1  ;;  %v782_v49 = vsel %vm781_vm5, %v710_v38, %v701_v44 }
 0x4e8   :  { %v738_v61 = vsel %vm105_vm1, %v687_v55, 0.0  ;;  %v757_v26 = vsel %vm105_vm1, %v692_v13, 0.0  ;;  %v913_v13 = vld [vmem:[%s1993_s6 + $0x40] sm:$0xff] }
 0x4e9   :  { %v733_v63 = vadd.f32 %v732_v57, %v731_v50  ;;  %v740_v1 = vadd.f32 %v739_v59, %v738_v61  ;;  %v645_v5 = vpop.permute.xlu0 %644  ;;  %v726_v22 = vadd.f32 %v725_v9, %v724_v3  ;;  %v719_v43 = vadd.f32 %v718_v32, %v717_v19 }
 0x4ea   :  { %v689_v7 = vmul.f32 %v673_v58, %v645_v5 }
 0x4eb   :  { %v741_v0 = vrot.slane %v740_v1, 4  ;;  %v734_v11 = vrot.slane %v733_v63, 2  ;;  %v727_v34 = vrot.slane %v726_v22, 1  ;;  %v784_v52 = vsel %vm783_vm6, %v719_v43, %v782_v49 }
 0x4ec   :  { %v747_v14 = vsel %vm105_vm1, %v689_v7, 0.0 }
 0x4ed   :  { %v742_v16 = vadd.f32 %v741_v0, %v740_v1  ;;  %v749_v17 = vadd.f32 %v748_v12, %v747_v14  ;;  %v656_v18 = vpop.permute.xlu0 %655  ;;  %v735_v25 = vadd.f32 %v734_v11, %v733_v63  ;;  %v728_v45 = vadd.f32 %v727_v34, %v726_v22  ;;  %v914_v14 = vld [vmem:[%s1993_s6 + $0x48] sm:$0xff] }
 0x4ee   :  { %v691_v20 = vmul.f32 %v675_v10, %v656_v18  ;;  %v882_v10 = vpop.permute.xlu1 %881 }
 0x4ef   :  { %v743_v23 = vrot.slane %v742_v16, 2  ;;  %v750_v24 = vrot.slane %v749_v17, 4  ;;  %v736_v37 = vrot.slane %v735_v25, 1  ;;  %v786_v55 = vsel %vm785_vm7, %v728_v45, %v784_v52 }
 0x4f0   :  { %v756_v27 = vsel %vm105_vm1, %v691_v20, 0.0 }
 0x4f1   :  { %v744_v29 = vadd.f32 %v743_v23, %v742_v16  ;;  %v751_v30 = vadd.f32 %v750_v24, %v749_v17  ;;  %v758_v31 = vadd.f32 %v757_v26, %v756_v27  ;;  %v737_v48 = vadd.f32 %v736_v37, %v735_v25  ;;  %v916_v17 = vld [vmem:[%s1993_s6 + $0x58] sm:$0xff]  ;;  %v1042_v23 = vld [vmem:[%s1993_s6 + $0x61] ss:$0 sm:$0xff]  ;;  %s1434_s6 = smov [#allocation8]  }
 0x4f2   :  { %v1307_v16 = vpack.c.bf16 %v914_v14, %v913_v13  ;;  %v1310_v18 = vpack.c.bf16 %v916_v17, %v915_v15 }
 0x4f3   :  { %v752_v35 = vrot.slane %v751_v30, 2  ;;  %v759_v36 = vrot.slane %v758_v31, 4  ;;  %v745_v39 = vrot.slane %v744_v29, 1  ;;  %v788_v3 = vsel %vm787_vm8, %v737_v48, %v786_v55 }
 0x4f4   :  { %1308 = vmatpush3.bf16.msra.mxu0 %v1307_v16 }
 0x4f5   :  { %v753_v41 = vadd.f32 %v752_v35, %v751_v30  ;;  %v760_v42 = vadd.f32 %v759_v36, %v758_v31  ;;  %v746_v50 = vadd.f32 %v745_v39, %v744_v29  ;;  %1309 = vmatprep.subr.bf16.mxu0 %v1429_v54 }
 0x4f7   :  { %v754_v46 = vrot.slane %v753_v41, 1  ;;  %v761_v47 = vrot.slane %v760_v42, 2  ;;  %v790_v58 = vsel %vm789_vm9, %v746_v50, %v788_v3 }
 0x4f8   :  { %1311 = vmatpush3.bf16.msra.mxu0 %v1310_v18 }
 0x4f9   :  { %v762_v51 = vadd.f32 %v761_v47, %v760_v42  ;;  %v755_v53 = vadd.f32 %v754_v46, %v753_v41 }
 0x4fb   :  { %v763_v56 = vrot.slane %v762_v51, 1  ;;  %v792_v59 = vsel %vm791_vm10, %v755_v53, %v790_v58 }
 0x4fd   :  { %v764_v57 = vadd.f32 %v763_v56, %v762_v51 }
 0x4ff   :  { %v794_v60 = vsel %vm793_vm11, %v764_v57, %v792_v59 }
 0x500   :  { %1173 = vmatmul.mubr.msk.f32.vlgmr.msra.gmra.mrb[4].mxu1 %vm105_vm1, %v794_v60 }
 0x5d3   :  { %v863_v61 = vpop.f32.mrb[4].mxu1 }
 0x5d4   :  { %v867_v63 = vadd.f32 %v863_v61, %v1836_v40  ;;  %v1174_v1 = vpop.f32.mrb[5].mxu1 }
 0x5d6   :  { %v873_v2 = vadd.f32 %v1040_v62, %v867_v63 }
 0x5d8   :  { %1341 = vtanh.f32 %v873_v2  ;;  %v1041_v5 = vmul.f32 -1.442695, %v873_v2 }
 0x5da   :  { %1343 = vpow2.f32 %v1041_v5 }
 0x5e2   :  { %v1342_v4 = vpop.eup %1341 }
 0x5e3   :  { %886 = vrot.lane.b32.xlu0 %v1342_v4, %s1433_s17 }
 0x5e4   :  { %v1344_v6 = vpop.eup %1343 }
 0x5e5   :  { %v877_v7 = vadd.f32 1.0, %v1344_v6 }
 0x5e7   :  { %1345 = vrcp.f32 %v877_v7 }
 0x5f1   :  { %v1346_v8 = vpop.eup %1345 }
 0x5f2   :  { %v884_v11 = vmul.f32 %v1346_v8, %v882_v10 }
 0x655   :  { %v887_v9 = vpop.permute.xlu0 %886 }
 0x656   :  { %v889_v0 = vmul.f32 %v1346_v8, %v887_v9 }
 0x658   :  { %891 = vrot.lane.b32.xlu0 %v889_v0, %s1428_s29 }
 0x6ca   :  { %v892_v40 = vpop.permute.xlu0 %891 }
 0x6cb   :  { %v894_v12 = vadd.f32 %v892_v40, %v884_v11 }
 0x6cd   :  { %1347 = vtanh.f32 %v894_v12 }
 0x6d7   :  { %v1348_v19 = vpop.eup %1347 }
 0x6d8   :  { %897 = vrot.lane.b32.xlu1 %v1348_v19, %s1433_s17 }
 0x74a   :  { %v898_v20 = vpop.permute.xlu1 %897 }
 0x74b   :  { %v900_v21 = vmul.f32 %v1346_v8, %v898_v20 }
 0x74d   :  { %902 = vrot.lane.b32.xlu0 %v900_v21, %s1428_s29 }
 0x7bf   :  { %v903_v22 = vpop.permute.xlu0 %902 }
 0x7c0   :  { %906 = vst.msk [vmem:[#allocation2] sm:$0xff] %vm905_vm12, %v903_v22  ;;  %1184 = vmatmul.mubr.msk.f32.vlgmr.msra.gmra.mrb[6].mxu0 %vm905_vm12, %v903_v22 }
 0x893   :  { %v990_v24 = vpop.f32.mrb[6].mxu0 }
 0x894   :  { %v991_v25 = vadd.f32 %v1042_v23, %v990_v24  ;;  %v1185_v26 = vpop.f32.mrb[7].mxu0 }
 0x896   :  { %v994_v54 = vsel %vm105_vm1, %v991_v25, -inf }
 0x897   :  { %995 = vmax.xlane.f32.xlu1 %v994_v54 }
 0x8a8   :  { %1010 = vrot.lane.b32.xlu1 %v894_v12, %s1433_s17 }
 0x8ac   :  { %908 = vrot.lane.b32.xlu1 %v894_v12, %s1428_s29  ;;  %s1025_s29 = sshll.u32 %s1434_s6, 4  ;;  %s1026_s29 = int_to_ptr.vmem [resolvable:$true] %s1025_s29 }
 0x8ad   :  { %s1397_s26 = scalar_lea.vmem %s1026_s29, 256  ;;  %p1402_p3 = scmp.lt.s32.totalorder %s1026_s29, %s1026_s29 }
 0x8ae   :  { %p1398_p2 = scmp.ne.s32.totalorder %s1026_s29, %s1397_s26  ;;  %p1403_p4 = scmp.lt.s32.totalorder %s1397_s26, %s1397_s26 }
 0x8b0   :  { %p1404_p5 = por %p1403_p4, %p1402_p3 }
 0x8b2   :  { %p1405_p6 = pnand %p1404_p5, %p1398_p2 }
 0x924   :  { %v996_v27 = vpop.xlane.xlu1 %995 }
 0x925   :  { %v997_v28 = vsub.f32 %v991_v25, %v996_v27 }
 0x927   :  { %v998_v29 = vmul.f32 1.442695, %v997_v28 }
 0x928   :  { %v1011_v30 = vpop.permute.xlu1 %1010 }
 0x929   :  { %1349 = vpow2.f32 %v998_v29 }
 0x92c   :  { %v909_v31 = vpop.permute.xlu1 %908 }
 0x92d   :  { %912 = vst.msk [vmem:[#allocation2] sm:$0xff] %vm911_vm13, %v909_v31 }
 0x933   :  { %v1350_v32 = vpop.eup %1349 }
 0x934   :  { %v1000_v33 = vsel %vm105_vm1, %v1350_v32, 0.0 }
 0x935   :  { %1001 = vadd.xlane.f32.xlu0 %v1000_v33 }
 0x94b   :  { %1007 = vrot.lane.b32.xlu0 %v900_v21, %s1432_s25 }
 0x9c2   :  { %v1002_v34 = vpop.xlane.xlu0 %1001 }
 0x9c3   :  { %1351 = vlog2.f32 %v1002_v34 }
 0x9c6   :  { %v1008_v39 = vpop.permute.xlu0 %1007 }
 0x9cd   :  { %v1352_v35 = vpop.eup %1351 }
 0x9ce   :  { %v1004_v36 = vmul.f32 0.6931472, %v1352_v35 }
 0x9d0   :  { %v1005_v37 = vadd.f32 %v1004_v36, %v996_v27 }
 0x9d2   :  { %v1006_v38 = vsub.f32 %v991_v25, %v1005_v37 }
 0x9d4   :  { %v1013_v41 = vsel %vm105_vm1, %v1006_v38, %v1008_v39 }
 0x9d5   :  { %v1015_v42 = vsel %vm1014_vm14, %v1013_v41, %v1011_v30 }
 0x9d6   :  { %1017 = vst [vmem:[#allocation8] sm:$0xff] %v1015_v42 }
 0x9d7   :  { %1408 = shalt.err (!%p1405_p6)
}
 0x9d8   :  { %s1409_s1 = scalar_lea.hbm %s1994_s7, 256 }
 0x9d9   :  { %p1410_p7 = scmp.ne.s32.totalorder %s1994_s7, %s1409_s1  ;;  %p1413_p8 = scmp.lt.u32.totalorder %s1409_s1, %s1994_s7 }
 0x9db   :  { %p1415_p9 = pnand %p1413_p8, %p1410_p7 }
 0x9dd   :  { %1418 = shalt.err (!%p1415_p9)
}
 0x9de   :  { %1028 = dma.vmem_to_hbm [thread:$0]  %s1026_s29, 256, %s1994_s7, [#allocation5]  }
 0x9df   :  { %1423 = dma.done.wait [#allocation5], 256  }
 0x9e0   :  { %1424 = vsyncadd [#allocation5], 4294967040 }
 0x9e1   :  { %1032 = vsyncpa [#allocation4], 1 }
 0x9e2   :  { %1033 = vsyncpa [#allocation7], 1 }
 0x9e3   :  { %1034 = vsyncpa [#allocation5], 1 }

</bundles_post_ra>
